<compile_context>
chip_gen: v7x
topology: tpu7x:2x2x1
jax: 0.10.0
libtpu: 0.0.40
codegen_flags: <defaults>
</compile_context>

<pallas_src>
import math
import jax
import jax.numpy as jnp
from jax.experimental import pallas as pl
from jax.experimental.pallas import tpu as pltpu

HIDDEN = 32
OUT = 8
NUM_LAYERS = 2
EPS_LN = 1e-6  # LayerNorm eps (added to the *std*, as in the custom PyTorch module)


def generator_kernel(x_ref, mask_ref,
                     w1_ref, b1_ref,
                     w2_ref, b2_ref,
                     wo_ref, bo_ref,
                     o_ref):
    # mask broadcast: (TILE, H) * (TILE, 1)  ==  x * repeat(mask, 'b m -> b m c')
    h = x_ref[...] * mask_ref[...]

    def mish(v):
        # x * tanh(softplus(x)) == x * e*(e+2) / (e^2 + 2e + 2) with e = exp(x)
        # (single EUP exp + approx reciprocal instead of logaddexp+tanh).
        # Clamp the exp argument: for v >= 20 the ratio is 1.0 to f32 precision.
        e = jnp.exp(jnp.minimum(v, 20.0))
        num = e * (e + 2.0)
        return v * num * pl.reciprocal(num + 2.0, approx=True)

    def layernorm_stats(v):
        # Normalization only; the affine (gamma/beta) is folded into the next
        # Linear's weights/bias on the host side.
        mean = jnp.mean(v, axis=-1, keepdims=True)
        var = jnp.sum((v - mean) ** 2, axis=-1, keepdims=True) * (1.0 / (HIDDEN - 1))
        std = jnp.sqrt(var)
        return (v - mean) * pl.reciprocal(std + EPS_LN, approx=True)

    # Block 1: Linear(H,H) -> Mish -> LayerNorm (affine folded into w2/b2)
    h = jnp.dot(h, w1_ref[...], preferred_element_type=jnp.float32) + b1_ref[...]
    h = layernorm_stats(mish(h))
    # Block 2: Linear(H,H) -> Mish -> LayerNorm (affine folded into wo/bo)
    h = jnp.dot(h, w2_ref[...], preferred_element_type=jnp.float32) + b2_ref[...]
    h = layernorm_stats(mish(h))
    # Dropout(p=0.0) -> identity (inference semantics)
    # Final projection Linear(H, OUT)
    o_ref[...] = jnp.dot(h, wo_ref[...], preferred_element_type=jnp.float32) + bo_ref[...]


def init_params(key):
    ks = jax.random.split(key, 6)
    s = 1.0 / math.sqrt(HIDDEN)
    return {
        "w1": jax.random.uniform(ks[0], (HIDDEN, HIDDEN), jnp.float32, -s, s),
        "b1": jax.random.uniform(ks[1], (1, HIDDEN), jnp.float32, -s, s),
        "g1": jnp.ones((1, HIDDEN), jnp.float32),    # LayerNorm a_2
        "be1": jnp.zeros((1, HIDDEN), jnp.float32),  # LayerNorm b_2
        "w2": jax.random.uniform(ks[2], (HIDDEN, HIDDEN), jnp.float32, -s, s),
        "b2": jax.random.uniform(ks[3], (1, HIDDEN), jnp.float32, -s, s),
        "g2": jnp.ones((1, HIDDEN), jnp.float32),
        "be2": jnp.zeros((1, HIDDEN), jnp.float32),
        "wo": jax.random.uniform(ks[4], (HIDDEN, OUT), jnp.float32, -s, s),
        "bo": jax.random.uniform(ks[5], (1, OUT), jnp.float32, -s, s),
    }


def generator_forward(x, mask, params, *, tile=2048):
    B, M, H = x.shape
    assert H == HIDDEN
    N = B * M

    # --- Host-side (free) folding of LayerNorm affine into the following Linear:
    #   (g*xhat + be) @ W + b  ==  xhat @ (diag(g) @ W) + (be @ W + b)
    g1 = params["g1"].reshape(HIDDEN, 1)
    be1 = params["be1"].reshape(1, HIDDEN)
    g2 = params["g2"].reshape(HIDDEN, 1)
    be2 = params["be2"].reshape(1, HIDDEN)
    w2f = g1 * params["w2"]
    b2f = params["b2"] + be1 @ params["w2"]
    wof = g2 * params["wo"]
    bof = params["bo"] + be2 @ params["wo"]

    xf = x.reshape(N, H).astype(jnp.float32)
    mf = mask.reshape(N, 1).astype(jnp.float32)

    # Row tile: biggest that fits comfortably in scoped VMEM on all generations
    # (a (2048,32) f32 block lane-pads to ~1 MiB, double-buffered -> well under
    # the 16 MiB v5e / 32 MiB v6e/v7x scoped defaults). Pad N to a tile multiple.
    tile = min(tile, max(8, ((N + 7) // 8) * 8))
    n_pad = ((N + tile - 1) // tile) * tile
    if n_pad != N:
        xf = jnp.pad(xf, ((0, n_pad - N), (0, 0)))
        mf = jnp.pad(mf, ((0, n_pad - N), (0, 0)))
    grid = (n_pad // tile,)

    def row_spec(shape):
        return pl.BlockSpec(shape, lambda i: (i, 0))

    def full_spec(shape):
        return pl.BlockSpec(shape, lambda i: (0, 0))

    # TODO(synk): on v6e/v7x a bf16 activation path (keep f32 matmul accum & LN
    # stats) would halve HBM traffic / double EUP throughput; kept f32 here for
    # v5e portability and tight numerical agreement with the reference.
    out = pl.pallas_call(
        generator_kernel,
        out_shape=jax.ShapeDtypeStruct((n_pad, OUT), jnp.float32),
        grid=grid,
        in_specs=[
            row_spec((tile, HIDDEN)),      # x rows
            row_spec((tile, 1)),           # mask rows
            full_spec((HIDDEN, HIDDEN)),   # w1
            full_spec((1, HIDDEN)),        # b1
            full_spec((HIDDEN, HIDDEN)),   # w2 (gamma1 folded)
            full_spec((1, HIDDEN)),        # b2 (beta1 folded)
            full_spec((HIDDEN, OUT)),      # wo (gamma2 folded)
            full_spec((1, OUT)),           # bo (beta2 folded)
        ],
        out_specs=row_spec((tile, OUT)),
        compiler_params=pltpu.CompilerParams(
            dimension_semantics=("parallel",)),
    )(xf, mf, params["w1"], params["b1"], w2f, b2f, wof, bof)
    return out[:N].reshape(B, M, OUT)


def generator_reference(x, mask, params):
    """Pure-JAX reference mirroring the PyTorch module (for verification)."""
    h = x.astype(jnp.float32) * mask.astype(jnp.float32)[..., None]

    def block(h, w, b, g, be):
        h = h @ w + b
        h = h * jnp.tanh(jnp.logaddexp(h, 0.0))           # Mish
        mean = jnp.mean(h, axis=-1, keepdims=True)
        std = jnp.sqrt(jnp.sum((h - mean) ** 2, axis=-1, keepdims=True) / (HIDDEN - 1))
        return g * (h - mean) / (std + EPS_LN) + be       # custom LayerNorm

    h = block(h, params["w1"], params["b1"], params["g1"], params["be1"])
    h = block(h, params["w2"], params["b2"], params["g2"], params["be2"])
    return h @ params["wo"] + params["bo"]


if __name__ == "__main__":
    key = jax.random.PRNGKey(0)
    kx, km, kp = jax.random.split(key, 3)

    B, M = 2, 8
    x = jax.random.normal(kx, (B, M, HIDDEN), jnp.float32)
    mask = (jax.random.uniform(km, (B, M)) > 0.3).astype(jnp.float32)
    params = init_params(kp)

    out = generator_forward(x, mask, params)
    out = jax.block_until_ready(out)

    ref = generator_reference(x, mask, params)
    assert out.shape == (B, M, OUT)
    # Loosened tolerance accounts for the approx-reciprocal (EUP vrcp) paths.
    assert jnp.allclose(out, ref, atol=1e-2, rtol=1e-2), "mismatch vs reference"

    # TODO(synk): training-mode Dropout (p>0) not implemented; inference identity used.
    print("KERNEL_OK")
</pallas_src>

<mosaic_0001>
module attributes {stable_mosaic.version = 11 : i64} {
  func.func @generator_kernel(%arg0: i32, %arg1: memref<16x32xf32, #tpu.memory_space<vmem>>, %arg2: memref<16x1xf32, #tpu.memory_space<vmem>>, %arg3: memref<32x32xf32, #tpu.memory_space<vmem>>, %arg4: memref<1x32xf32, #tpu.memory_space<vmem>>, %arg5: memref<32x32xf32, #tpu.memory_space<vmem>>, %arg6: memref<1x32xf32, #tpu.memory_space<vmem>>, %arg7: memref<32x8xf32, #tpu.memory_space<vmem>>, %arg8: memref<1x8xf32, #tpu.memory_space<vmem>>, %arg9: memref<16x8xf32, #tpu.memory_space<vmem>>) attributes {dimension_semantics = [#tpu.dimension_semantics<parallel>], iteration_bounds = array<i64: 1>, scalar_prefetch = 0 : i64, scratch_operands = 0 : i64, tpu.core_type = #tpu.core_type<tc>, window_params = [{transform_indices = @transform_0, window_bounds = array<i64: 16, 32>}, {transform_indices = @transform_1, window_bounds = array<i64: 16, 1>}, {pipeline_mode = #tpu.pipeline_mode<synchronous>, transform_indices = @transform_2, window_bounds = array<i64: 32, 32>}, {pipeline_mode = #tpu.pipeline_mode<synchronous>, transform_indices = @transform_3, window_bounds = array<i64: 1, 32>}, {pipeline_mode = #tpu.pipeline_mode<synchronous>, transform_indices = @transform_4, window_bounds = array<i64: 32, 32>}, {pipeline_mode = #tpu.pipeline_mode<synchronous>, transform_indices = @transform_5, window_bounds = array<i64: 1, 32>}, {pipeline_mode = #tpu.pipeline_mode<synchronous>, transform_indices = @transform_6, window_bounds = array<i64: 32, 8>}, {pipeline_mode = #tpu.pipeline_mode<synchronous>, transform_indices = @transform_7, window_bounds = array<i64: 1, 8>}, {transform_indices = @transform_8, window_bounds = array<i64: 16, 8>}]} {
    %c0 = arith.constant 0 : index
    %c0_0 = arith.constant 0 : index
    %0 = vector.load %arg1[%c0, %c0_0] : memref<16x32xf32, #tpu.memory_space<vmem>>, vector<16x32xf32>
    %c0_1 = arith.constant 0 : index
    %c0_2 = arith.constant 0 : index
    %1 = vector.load %arg2[%c0_1, %c0_2] : memref<16x1xf32, #tpu.memory_space<vmem>>, vector<16x1xf32>
    %2 = vector.broadcast %1 : vector<16x1xf32> to vector<16x32xf32>
    %3 = arith.mulf %0, %2 : vector<16x32xf32>
    %c0_3 = arith.constant 0 : index
    %c0_4 = arith.constant 0 : index
    %4 = vector.load %arg3[%c0_3, %c0_4] : memref<32x32xf32, #tpu.memory_space<vmem>>, vector<32x32xf32>
    %cst = arith.constant dense<0.000000e+00> : vector<16x32xf32>
    %5 = tpu.matmul %3, %4, %cst {dimension_numbers = #tpu.dot_dimension_numbers<[1], [0], [0], [1], [0, 0, 1, 1], [], []>} : vector<16x32xf32>, vector<32x32xf32>, vector<16x32xf32> -> vector<16x32xf32>
    %c0_5 = arith.constant 0 : index
    %c0_6 = arith.constant 0 : index
    %6 = vector.load %arg4[%c0_5, %c0_6] : memref<1x32xf32, #tpu.memory_space<vmem>>, vector<1x32xf32>
    %7 = vector.broadcast %6 : vector<1x32xf32> to vector<16x32xf32>
    %8 = arith.addf %5, %7 : vector<16x32xf32>
    %cst_7 = arith.constant 2.000000e+01 : f32
    %9 = vector.broadcast %cst_7 : f32 to vector<16x32xf32>
    %10 = arith.minimumf %8, %9 : vector<16x32xf32>
    %11 = math.exp %10 : vector<16x32xf32>
    %cst_8 = arith.constant 2.000000e+00 : f32
    %12 = vector.broadcast %cst_8 : f32 to vector<16x32xf32>
    %13 = arith.addf %11, %12 : vector<16x32xf32>
    %14 = arith.mulf %11, %13 : vector<16x32xf32>
    %15 = arith.mulf %8, %14 : vector<16x32xf32>
    %cst_9 = arith.constant 2.000000e+00 : f32
    %16 = vector.broadcast %cst_9 : f32 to vector<16x32xf32>
    %17 = arith.addf %14, %16 : vector<16x32xf32>
    %18 = tpu.reciprocal %17 {approx = true} : vector<16x32xf32> -> vector<16x32xf32>
    %19 = arith.mulf %15, %18 : vector<16x32xf32>
    %cst_10 = arith.constant dense<0.000000e+00> : vector<16xf32>
    %20 = vector.multi_reduction <add>, %19, %cst_10 [1] : vector<16x32xf32> to vector<16xf32>
    %21 = vector.shape_cast %20 : vector<16xf32> to vector<16x1xf32>
    %cst_11 = arith.constant 3.200000e+01 : f32
    %22 = vector.broadcast %cst_11 : f32 to vector<16x1xf32>
    %23 = arith.divf %21, %22 : vector<16x1xf32>
    %24 = vector.broadcast %23 : vector<16x1xf32> to vector<16x32xf32>
    %25 = arith.subf %19, %24 : vector<16x32xf32>
    %26 = arith.mulf %25, %25 : vector<16x32xf32>
    %cst_12 = arith.constant dense<0.000000e+00> : vector<16xf32>
    %27 = vector.multi_reduction <add>, %26, %cst_12 [1] : vector<16x32xf32> to vector<16xf32>
    %28 = vector.shape_cast %27 : vector<16xf32> to vector<16x1xf32>
    %cst_13 = arith.constant 0.0322580636 : f32
    %29 = vector.broadcast %cst_13 : f32 to vector<16x1xf32>
    %30 = arith.mulf %28, %29 : vector<16x1xf32>
    %31 = math.sqrt %30 : vector<16x1xf32>
    %32 = vector.broadcast %23 : vector<16x1xf32> to vector<16x32xf32>
    %33 = arith.subf %19, %32 : vector<16x32xf32>
    %cst_14 = arith.constant 9.99999997E-7 : f32
    %34 = vector.broadcast %cst_14 : f32 to vector<16x1xf32>
    %35 = arith.addf %31, %34 : vector<16x1xf32>
    %36 = tpu.reciprocal %35 {approx = true} : vector<16x1xf32> -> vector<16x1xf32>
    %37 = vector.broadcast %36 : vector<16x1xf32> to vector<16x32xf32>
    %38 = arith.mulf %33, %37 : vector<16x32xf32>
    %c0_15 = arith.constant 0 : index
    %c0_16 = arith.constant 0 : index
    %39 = vector.load %arg5[%c0_15, %c0_16] : memref<32x32xf32, #tpu.memory_space<vmem>>, vector<32x32xf32>
    %cst_17 = arith.constant dense<0.000000e+00> : vector<16x32xf32>
    %40 = tpu.matmul %38, %39, %cst_17 {dimension_numbers = #tpu.dot_dimension_numbers<[1], [0], [0], [1], [0, 0, 1, 1], [], []>} : vector<16x32xf32>, vector<32x32xf32>, vector<16x32xf32> -> vector<16x32xf32>
    %c0_18 = arith.constant 0 : index
    %c0_19 = arith.constant 0 : index
    %41 = vector.load %arg6[%c0_18, %c0_19] : memref<1x32xf32, #tpu.memory_space<vmem>>, vector<1x32xf32>
    %42 = vector.broadcast %41 : vector<1x32xf32> to vector<16x32xf32>
    %43 = arith.addf %40, %42 : vector<16x32xf32>
    %cst_20 = arith.constant 2.000000e+01 : f32
    %44 = vector.broadcast %cst_20 : f32 to vector<16x32xf32>
    %45 = arith.minimumf %43, %44 : vector<16x32xf32>
    %46 = math.exp %45 : vector<16x32xf32>
    %cst_21 = arith.constant 2.000000e+00 : f32
    %47 = vector.broadcast %cst_21 : f32 to vector<16x32xf32>
    %48 = arith.addf %46, %47 : vector<16x32xf32>
    %49 = arith.mulf %46, %48 : vector<16x32xf32>
    %50 = arith.mulf %43, %49 : vector<16x32xf32>
    %cst_22 = arith.constant 2.000000e+00 : f32
    %51 = vector.broadcast %cst_22 : f32 to vector<16x32xf32>
    %52 = arith.addf %49, %51 : vector<16x32xf32>
    %53 = tpu.reciprocal %52 {approx = true} : vector<16x32xf32> -> vector<16x32xf32>
    %54 = arith.mulf %50, %53 : vector<16x32xf32>
    %cst_23 = arith.constant dense<0.000000e+00> : vector<16xf32>
    %55 = vector.multi_reduction <add>, %54, %cst_23 [1] : vector<16x32xf32> to vector<16xf32>
    %56 = vector.shape_cast %55 : vector<16xf32> to vector<16x1xf32>
    %cst_24 = arith.constant 3.200000e+01 : f32
    %57 = vector.broadcast %cst_24 : f32 to vector<16x1xf32>
    %58 = arith.divf %56, %57 : vector<16x1xf32>
    %59 = vector.broadcast %58 : vector<16x1xf32> to vector<16x32xf32>
    %60 = arith.subf %54, %59 : vector<16x32xf32>
    %61 = arith.mulf %60, %60 : vector<16x32xf32>
    %cst_25 = arith.constant dense<0.000000e+00> : vector<16xf32>
    %62 = vector.multi_reduction <add>, %61, %cst_25 [1] : vector<16x32xf32> to vector<16xf32>
    %63 = vector.shape_cast %62 : vector<16xf32> to vector<16x1xf32>
    %cst_26 = arith.constant 0.0322580636 : f32
    %64 = vector.broadcast %cst_26 : f32 to vector<16x1xf32>
    %65 = arith.mulf %63, %64 : vector<16x1xf32>
    %66 = math.sqrt %65 : vector<16x1xf32>
    %67 = vector.broadcast %58 : vector<16x1xf32> to vector<16x32xf32>
    %68 = arith.subf %54, %67 : vector<16x32xf32>
    %cst_27 = arith.constant 9.99999997E-7 : f32
    %69 = vector.broadcast %cst_27 : f32 to vector<16x1xf32>
    %70 = arith.addf %66, %69 : vector<16x1xf32>
    %71 = tpu.reciprocal %70 {approx = true} : vector<16x1xf32> -> vector<16x1xf32>
    %72 = vector.broadcast %71 : vector<16x1xf32> to vector<16x32xf32>
    %73 = arith.mulf %68, %72 : vector<16x32xf32>
    %c0_28 = arith.constant 0 : index
    %c0_29 = arith.constant 0 : index
    %74 = vector.load %arg7[%c0_28, %c0_29] : memref<32x8xf32, #tpu.memory_space<vmem>>, vector<32x8xf32>
    %cst_30 = arith.constant dense<0.000000e+00> : vector<16x8xf32>
    %75 = tpu.matmul %73, %74, %cst_30 {dimension_numbers = #tpu.dot_dimension_numbers<[1], [0], [0], [1], [0, 0, 1, 1], [], []>} : vector<16x32xf32>, vector<32x8xf32>, vector<16x8xf32> -> vector<16x8xf32>
    %c0_31 = arith.constant 0 : index
    %c0_32 = arith.constant 0 : index
    %76 = vector.load %arg8[%c0_31, %c0_32] : memref<1x8xf32, #tpu.memory_space<vmem>>, vector<1x8xf32>
    %77 = vector.broadcast %76 : vector<1x8xf32> to vector<16x8xf32>
    %78 = arith.addf %75, %77 : vector<16x8xf32>
    %c0_33 = arith.constant 0 : index
    %c0_34 = arith.constant 0 : index
    %79 = vector.load %arg9[%c0_33, %c0_34] : memref<16x8xf32, #tpu.memory_space<vmem>>, vector<16x8xf32>
    tpu.vector_store %arg9[%c0_33, %c0_34], %78 {strides = array<i32>} : memref<16x8xf32, #tpu.memory_space<vmem>>, vector<16x8xf32>,
    return
  }
  func.func @transform_0(%arg0: i32) -> (i32, i32) {
    %c0_i32 = arith.constant 0 : i32
    %c0_i32_0 = arith.constant 0 : i32
    return %arg0, %c0_i32 : i32, i32
  }
  func.func @transform_1(%arg0: i32) -> (i32, i32) {
    %c0_i32 = arith.constant 0 : i32
    %c0_i32_0 = arith.constant 0 : i32
    return %arg0, %c0_i32 : i32, i32
  }
  func.func @transform_2(%arg0: i32) -> (i32, i32) {
    %c0_i32 = arith.constant 0 : i32
    %c0_i32_0 = arith.constant 0 : i32
    %c0_i32_1 = arith.constant 0 : i32
    return %c0_i32, %c0_i32_0 : i32, i32
  }
  func.func @transform_3(%arg0: i32) -> (i32, i32) {
    %c0_i32 = arith.constant 0 : i32
    %c0_i32_0 = arith.constant 0 : i32
    %c0_i32_1 = arith.constant 0 : i32
    return %c0_i32, %c0_i32_0 : i32, i32
  }
  func.func @transform_4(%arg0: i32) -> (i32, i32) {
    %c0_i32 = arith.constant 0 : i32
    %c0_i32_0 = arith.constant 0 : i32
    %c0_i32_1 = arith.constant 0 : i32
    return %c0_i32, %c0_i32_0 : i32, i32
  }
  func.func @transform_5(%arg0: i32) -> (i32, i32) {
    %c0_i32 = arith.constant 0 : i32
    %c0_i32_0 = arith.constant 0 : i32
    %c0_i32_1 = arith.constant 0 : i32
    return %c0_i32, %c0_i32_0 : i32, i32
  }
  func.func @transform_6(%arg0: i32) -> (i32, i32) {
    %c0_i32 = arith.constant 0 : i32
    %c0_i32_0 = arith.constant 0 : i32
    %c0_i32_1 = arith.constant 0 : i32
    return %c0_i32, %c0_i32_0 : i32, i32
  }
  func.func @transform_7(%arg0: i32) -> (i32, i32) {
    %c0_i32 = arith.constant 0 : i32
    %c0_i32_0 = arith.constant 0 : i32
    %c0_i32_1 = arith.constant 0 : i32
    return %c0_i32, %c0_i32_0 : i32, i32
  }
  func.func @transform_8(%arg0: i32) -> (i32, i32) {
    %c0_i32 = arith.constant 0 : i32
    %c0_i32_0 = arith.constant 0 : i32
    return %arg0, %c0_i32 : i32, i32
  }
}

</mosaic_0001>

<bundles_post_ra>
// kernel: tpu_custom_call.1
= control target key start
LH: loop header
LB: loop body
LE: loop exit
PB: predicated region body
PF: predicated region fallthrough
CT: control target
= control target key end

     0   :  { %13 = vsyncpa [#allocation3], 0  ;;  %s786_s0 = inlined_call_operand.hbm [shape: f32[16,32], index: 0, kind: input, shape index: {}]   ;;  %s787_s1 = inlined_call_operand.vmem [shape: f32[16,1], index: 1, kind: input, shape index: {}]   ;;  %s788_s2 = inlined_call_operand.vmem [shape: f32[32,32], index: 2, kind: input, shape index: {}]   ;;  %s789_s3 = inlined_call_operand.hbm [shape: f32[1,32], index: 3, kind: input, shape index: {}]   ;;  %s790_s4 = inlined_call_operand.vmem [shape: f32[32,32], index: 4, kind: input, shape index: {}]   ;;  %s791_s5 = inlined_call_operand.vmem [shape: f32[1,32], index: 5, kind: input, shape index: {}]   ;;  %s792_s6 = inlined_call_operand.vmem [shape: f32[32,8], index: 6, kind: input, shape index: {}]   ;;  %s793_s7 = inlined_call_operand.vmem [shape: f32[1,8], index: 7, kind: input, shape index: {}]   ;;  %s794_s8 = inlined_call_operand.vmem [shape: f32[16,8], index: 8, kind: output, shape index: {}]  }
   0x1   :  { %14 = vsyncpa [#allocation5], 0  ;;  %s644_s27 = smov [#allocation2]   ;;  %s596_s9 = scalar_lea.hbm %s786_s0, 256 }
   0x2   :  { %s20_s28 = sshll.u32 %s644_s27, 4  ;;  %p597_p0 = scmp.ne.s32.totalorder %s786_s0, %s596_s9  ;;  %s21_s28 = int_to_ptr.vmem [resolvable:$true] %s20_s28 }
   0x3   :  { %p600_p1 = scmp.lt.u32.totalorder %s596_s9, %s786_s0 }
   0x5   :  { %p602_p2 = pnand %p600_p1, %p597_p0 }
   0x7   :  { %605 = shalt.err (!%p602_p2)
}
   0x8   :  { %s606_s14 = scalar_lea.vmem %s21_s28, 256  ;;  %p611_p4 = scmp.lt.s32.totalorder %s21_s28, %s21_s28 }
   0x9   :  { %p607_p3 = scmp.ne.s32.totalorder %s21_s28, %s606_s14  ;;  %p612_p5 = scmp.lt.s32.totalorder %s606_s14, %s606_s14 }
   0xb   :  { %p613_p6 = por %p612_p5, %p611_p4 }
   0xd   :  { %p614_p7 = pnand %p613_p6, %p607_p3 }
   0xf   :  { %617 = shalt.err (!%p614_p7)
}
  0x10   :  { %s645_s15 = smov 128   ;;  %s646_s16 = smov 8  }
  0x11   :  { %26 = dma.hbm_to_vmem [thread:$0]  %s786_s0, 256, %s21_s28, [#allocation3], %s645_s15, %s645_s15, %s646_s16  }
  0x12   :  { %s647_s19 = smov [#allocation4]   ;;  %s618_s23 = scalar_lea.hbm %s789_s3, 16 }
  0x13   :  { %s37_s20 = sshll.u32 %s647_s19, 4  ;;  %p619_p8 = scmp.ne.s32.totalorder %s789_s3, %s618_s23  ;;  %s38_s20 = int_to_ptr.vmem [resolvable:$true] %s37_s20 }
  0x14   :  { %p622_p9 = scmp.lt.u32.totalorder %s618_s23, %s789_s3 }
  0x16   :  { %p624_p10 = pnand %p622_p9, %p619_p8 }
  0x18   :  { %627 = shalt.err (!%p624_p10)
}
  0x19   :  { %s628_s29 = scalar_lea.vmem %s38_s20, 16  ;;  %s632_s0 = scalar_lea.vmem %s38_s20, 32 }
  0x1a   :  { %p629_p11 = scmp.ne.s32.totalorder %s38_s20, %s628_s29  ;;  %p633_p12 = scmp.lt.s32.totalorder %s38_s20, %s38_s20 }
  0x1b   :  { %p634_p13 = scmp.lt.s32.totalorder %s632_s0, %s628_s29 }
  0x1d   :  { %p635_p0 = por %p634_p13, %p633_p12 }
  0x1f   :  { %p636_p1 = pnand %p635_p0, %p629_p11 }
  0x21   :  { %639 = shalt.err (!%p636_p1)
}
  0x22   :  { %40 = dma.hbm_to_vmem [thread:$0]  %s789_s3, 16, %s38_s20, [#allocation5]  }
  0x23   :  { %640 = dma.done.wait [#allocation3], 256  }
  0x24   :  { %641 = vsyncadd [#allocation3], 4294967040 }
  0x25   :  { %642 = dma.done.wait [#allocation5], 16  }
  0x26   :  { %643 = vsyncadd [#allocation5], 4294967280  ;;  %v648_v0 = vmov 0   ;;  %v57_v1 = vld [vmem:[%s787_s1] sm:$0xff]  ;;  %v72_v3 = vld [vmem:[%s788_s2 + $0x8] sm:$0xff]  ;;  %vm82_vm0 = vcmask 261120  }
  0x27   :  { %563 = vset.pattern.permute.xlu0 %v648_v0  ;;  %v71_v2 = vld [vmem:[%s788_s2] sm:$0xff]  ;;  %v73_v4 = vld [vmem:[%s788_s2 + $0x10] sm:$0xff]  ;;  %v58_v5 = vld [vmem:[%s787_s1 + $0x8] sm:$0xff]  ;;  %vm465_vm9 = vcmask 64512  }
  0x28   :  { %61 = vperm.xlu0 %563, %v57_v1   ;;  %v534_v6 = vpack.c.bf16 %v72_v3, %v71_v2  ;;  %v74_v7 = vld [vmem:[%s788_s2 + $0x18] sm:$0xff]  ;;  %v55_v9 = vld [vmem:[#allocation2] sm:$0xff]  ;;  %v56_v12 = vld [vmem:[#allocation2 + $0x8] sm:$0xff] }
  0x29   :  { %v538_v8 = vpack.c.bf16 %v74_v7, %v73_v4  ;;  %v474_v15 = vld [vmem:[#allocation4] ss:$0 sm:$0xff]  ;;  %v223_v50 = vld [vmem:[%s790_s4] sm:$0xff]  ;;  %v224_v51 = vld [vmem:[%s790_s4 + $0x8] sm:$0xff] }
  0x2a   :  { %535 = vmatprep.subr.bf16.mxu0 %v534_v6  ;;  %v225_v52 = vld [vmem:[%s790_s4 + $0x10] sm:$0xff]  ;;  %v542_v53 = vpack.c.bf16 %v224_v51, %v223_v50  ;;  %v226_v54 = vld [vmem:[%s790_s4 + $0x18] sm:$0xff] }
  0x2b   :  { %537 = vmatpush3.bf16.msra.mxu0 %v534_v6  ;;  %v546_v55 = vpack.c.bf16 %v226_v54, %v225_v52  ;;  %v376_v51 = vld [vmem:[%s792_s6 + $0x18] sm:$0xff] }
  0x2c   :  { %66 = vperm.xlu0 %563, %v58_v5   ;;  %539 = vmatprep.subr.bf16.mxu0 %v538_v8 }
  0x2d   :  { %543 = vmatprep.subr.bf16.mxu1 %v542_v53 }
  0x2e   :  { %545 = vmatpush3.bf16.msra.mxu1 %v542_v53 }
  0x2f   :  { %541 = vmatpush3.bf16.msra.mxu0 %v538_v8  ;;  %547 = vmatprep.subr.bf16.mxu1 %v546_v55 }
  0x32   :  { %549 = vmatpush3.bf16.msra.mxu1 %v546_v55 }
  0xa7   :  { %v62_v10 = vpop.permute.xlu0 %61 }
  0xa8   :  { %v69_v11 = vmul.f32 %v62_v10, %v55_v9 }
  0xaa   :  { %509 = vmatprep.mubr.msk.f32.mxu0 %vm82_vm0, %v69_v11 }
  0xab   :  { %v67_v13 = vpop.permute.xlu0 %66 }
  0xac   :  { %v70_v14 = vmul.f32 %v67_v13, %v56_v12  ;;  %v477_v12 = vld [vmem:[%s791_s5] ss:$0 sm:$0xff] }
  0xae   :  { %510 = vmatmul.mubr.msk.f32.vlgmr.msra.gmra.mrb[0].mxu0 %vm82_vm0, %v70_v14 }
 0x181   :  { %v511_v16 = vpop.f32.mrb[0].mxu0 }
 0x182   :  { %v161_v17 = vadd.f32 %v511_v16, %v474_v15  ;;  %v155_v18 = vpop.f32.mrb[1].mxu0 }
 0x183   :  { %v156_v19 = vadd.f32 %v474_v15, %v155_v18 }
 0x184   :  { %v165_v20 = vmin.f32 %v161_v17, 20.0 }
 0x185   :  { %v164_v21 = vmin.f32 %v156_v19, 20.0 }
 0x186   :  { %v168_v22 = vmul.f32 1.442695, %v165_v20 }
 0x187   :  { %v166_v23 = vmul.f32 1.442695, %v164_v21 }
 0x188   :  { %564 = vpow2.f32 %v168_v22 }
 0x189   :  { %566 = vpow2.f32 %v166_v23 }
 0x192   :  { %v565_v24 = vpop.eup %564 }
 0x193   :  { %v567_v25 = vpop.eup %566  ;;  %v171_v26 = vadd.f32 2.0, %v565_v24 }
 0x194   :  { %v170_v27 = vadd.f32 2.0, %v567_v25 }
 0x195   :  { %v173_v28 = vmul.f32 %v565_v24, %v171_v26 }
 0x196   :  { %v172_v29 = vmul.f32 %v567_v25, %v170_v27 }
 0x197   :  { %v177_v30 = vadd.f32 2.0, %v173_v28  ;;  %v175_v35 = vmul.f32 %v173_v28, %v161_v17 }
 0x198   :  { %v176_v31 = vadd.f32 2.0, %v172_v29  ;;  %v174_v33 = vmul.f32 %v172_v29, %v156_v19 }
 0x199   :  { %568 = vrcp.f32 %v177_v30 }
 0x19a   :  { %570 = vrcp.f32 %v176_v31 }
 0x1a3   :  { %v569_v32 = vpop.eup %568 }
 0x1a4   :  { %v571_v34 = vpop.eup %570  ;;  %v181_v38 = vmul.f32 %v569_v32, %v175_v35 }
 0x1a5   :  { %v180_v36 = vmul.f32 %v571_v34, %v174_v33 }
 0x1a6   :  { %v185_v39 = vsel %vm82_vm0, %v181_v38, 0.0 }
 0x1a7   :  { %v182_v37 = vsel %vm82_vm0, %v180_v36, 0.0 }
 0x1a8   :  { %183 = vadd.xlane.f32.xlu1 %v182_v37 }
 0x1ac   :  { %186 = vadd.xlane.f32.xlu1 %v185_v39 }
 0x235   :  { %v184_v40 = vpop.xlane.xlu1 %183 }
 0x236   :  { %v189_v41 = vmul.f32 0.03125, %v184_v40 }
 0x238   :  { %v191_v42 = vsub.f32 %v180_v36, %v189_v41 }
 0x239   :  { %v187_v43 = vpop.xlane.xlu1 %186 }
 0x23a   :  { %v190_v44 = vmul.f32 0.03125, %v187_v43  ;;  %v193_v45 = vmul.f32 %v191_v42, %v191_v42 }
 0x23c   :  { %v192_v46 = vsub.f32 %v181_v38, %v190_v44  ;;  %v195_v47 = vsel %vm82_vm0, %v193_v45, 0.0 }
 0x23d   :  { %196 = vadd.xlane.f32.xlu0 %v195_v47  ;;  %v373_v47 = vld [vmem:[%s792_s6] sm:$0xff] }
 0x23e   :  { %v194_v48 = vmul.f32 %v192_v46, %v192_v46 }
 0x240   :  { %v198_v49 = vsel %vm82_vm0, %v194_v48, 0.0  ;;  %v374_v48 = vld [vmem:[%s792_s6 + $0x8] sm:$0xff] }
 0x241   :  { %199 = vadd.xlane.f32.xlu1 %v198_v49  ;;  %v375_v49 = vld [vmem:[%s792_s6 + $0x10] sm:$0xff]  ;;  %v550_v50 = vpack.c.bf16 %v374_v48, %v373_v47 }
 0x242   :  { %v554_v52 = vpack.c.bf16 %v376_v51, %v375_v49 }
 0x243   :  { %551 = vmatprep.subr.bf16.mxu0 %v550_v50 }
 0x244   :  { %553 = vmatpush3.bf16.msra.mxu0 %v550_v50 }
 0x245   :  { %555 = vmatprep.subr.bf16.mxu0 %v554_v52 }
 0x248   :  { %557 = vmatpush3.bf16.msra.mxu0 %v554_v52 }
 0x2ca   :  { %v197_v56 = vpop.xlane.xlu0 %196 }
 0x2cb   :  { %v201_v57 = vmul.f32 0.032258064, %v197_v56 }
 0x2cd   :  { %572 = vrsqrt.f32 %v201_v57  ;;  %vm205_vm1 = vcmp.eq.f32.partialorder %v201_v57, inf  ;;  %v208_v62 = vand.u32 2147483648, %v201_v57  ;;  %vm207_vm2 = vcmp.eq.f32.partialorder %v201_v57, 0.0 }
 0x2ce   :  { %v200_v58 = vpop.xlane.xlu1 %199 }
 0x2cf   :  { %v202_v59 = vmul.f32 0.032258064, %v200_v58 }
 0x2d1   :  { %574 = vrsqrt.f32 %v202_v59  ;;  %vm212_vm3 = vcmp.eq.f32.partialorder %v202_v59, inf  ;;  %v215_v4 = vand.u32 2147483648, %v202_v59  ;;  %vm214_vm4 = vcmp.eq.f32.partialorder %v202_v59, 0.0 }
 0x2d7   :  { %v573_v60 = vpop.eup %572 }
 0x2d8   :  { %v204_v61 = vmul.f32 %v573_v60, %v201_v57 }
 0x2da   :  { %v206_v63 = vsel %vm205_vm1, %v201_v57, %v204_v61 }
 0x2db   :  { %v575_v0 = vpop.eup %574  ;;  %v209_v1 = vsel %vm207_vm2, %v208_v62, %v206_v63 }
 0x2dc   :  { %v211_v2 = vmul.f32 %v575_v0, %v202_v59  ;;  %v217_v3 = vadd.f32 1e-06, %v209_v1 }
 0x2de   :  { %v213_v5 = vsel %vm212_vm3, %v202_v59, %v211_v2  ;;  %576 = vrcp.f32 %v217_v3 }
 0x2df   :  { %v216_v6 = vsel %vm214_vm4, %v215_v4, %v213_v5 }
 0x2e0   :  { %v218_v7 = vadd.f32 1e-06, %v216_v6 }
 0x2e2   :  { %578 = vrcp.f32 %v218_v7 }
 0x2e8   :  { %v577_v8 = vpop.eup %576 }
 0x2e9   :  { %v221_v9 = vmul.f32 %v577_v8, %v191_v42 }
 0x2eb   :  { %520 = vmatprep.mubr.msk.f32.mxu1 %vm82_vm0, %v221_v9  ;;  %v480_v9 = vld [vmem:[%s793_s7] ss:$0 sm:$0xff] }
 0x2ec   :  { %v579_v10 = vpop.eup %578 }
 0x2ed   :  { %v222_v11 = vmul.f32 %v579_v10, %v192_v46 }
 0x2ef   :  { %521 = vmatmul.mubr.msk.f32.vlgmr.msra.gmra.mrb[0].mxu1 %vm82_vm0, %v222_v11 }
 0x3c2   :  { %v522_v13 = vpop.f32.mrb[0].mxu1 }
 0x3c3   :  { %v312_v14 = vadd.f32 %v522_v13, %v477_v12  ;;  %v306_v15 = vpop.f32.mrb[1].mxu1 }
 0x3c4   :  { %v307_v16 = vadd.f32 %v477_v12, %v306_v15 }
 0x3c5   :  { %v316_v17 = vmin.f32 %v312_v14, 20.0 }
 0x3c6   :  { %v315_v18 = vmin.f32 %v307_v16, 20.0 }
 0x3c7   :  { %v319_v19 = vmul.f32 1.442695, %v316_v17 }
 0x3c8   :  { %v317_v20 = vmul.f32 1.442695, %v315_v18 }
 0x3c9   :  { %580 = vpow2.f32 %v319_v19 }
 0x3ca   :  { %582 = vpow2.f32 %v317_v20 }
 0x3d3   :  { %v581_v21 = vpop.eup %580 }
 0x3d4   :  { %v583_v22 = vpop.eup %582  ;;  %v322_v23 = vadd.f32 2.0, %v581_v21 }
 0x3d5   :  { %v321_v24 = vadd.f32 2.0, %v583_v22 }
 0x3d6   :  { %v324_v25 = vmul.f32 %v581_v21, %v322_v23 }
 0x3d7   :  { %v323_v26 = vmul.f32 %v583_v22, %v321_v24 }
 0x3d8   :  { %v328_v27 = vadd.f32 2.0, %v324_v25  ;;  %v326_v32 = vmul.f32 %v324_v25, %v312_v14 }
 0x3d9   :  { %v327_v28 = vadd.f32 2.0, %v323_v26  ;;  %v325_v30 = vmul.f32 %v323_v26, %v307_v16 }
 0x3da   :  { %584 = vrcp.f32 %v328_v27 }
 0x3db   :  { %586 = vrcp.f32 %v327_v28 }
 0x3e4   :  { %v585_v29 = vpop.eup %584 }
 0x3e5   :  { %v587_v31 = vpop.eup %586  ;;  %v332_v35 = vmul.f32 %v585_v29, %v326_v32 }
 0x3e6   :  { %v331_v33 = vmul.f32 %v587_v31, %v325_v30 }
 0x3e7   :  { %v336_v36 = vsel %vm82_vm0, %v332_v35, 0.0 }
 0x3e8   :  { %v333_v34 = vsel %vm82_vm0, %v331_v33, 0.0 }
 0x3e9   :  { %334 = vadd.xlane.f32.xlu1 %v333_v34 }
 0x3ed   :  { %337 = vadd.xlane.f32.xlu1 %v336_v36 }
 0x476   :  { %v335_v37 = vpop.xlane.xlu1 %334 }
 0x477   :  { %v339_v38 = vmul.f32 0.03125, %v335_v37 }
 0x479   :  { %v341_v39 = vsub.f32 %v331_v33, %v339_v38 }
 0x47a   :  { %v338_v40 = vpop.xlane.xlu1 %337 }
 0x47b   :  { %v340_v41 = vmul.f32 0.03125, %v338_v40  ;;  %v343_v42 = vmul.f32 %v341_v39, %v341_v39 }
 0x47d   :  { %v342_v43 = vsub.f32 %v332_v35, %v340_v41  ;;  %v345_v44 = vsel %vm82_vm0, %v343_v42, 0.0 }
 0x47e   :  { %346 = vadd.xlane.f32.xlu1 %v345_v44 }
 0x47f   :  { %v344_v45 = vmul.f32 %v342_v43, %v342_v43 }
 0x481   :  { %v348_v46 = vsel %vm82_vm0, %v344_v45, 0.0 }
 0x482   :  { %349 = vadd.xlane.f32.xlu1 %v348_v46 }
 0x50b   :  { %v347_v53 = vpop.xlane.xlu1 %346 }
 0x50c   :  { %v351_v54 = vmul.f32 0.032258064, %v347_v53 }
 0x50e   :  { %588 = vrsqrt.f32 %v351_v54  ;;  %vm355_vm5 = vcmp.eq.f32.partialorder %v351_v54, inf  ;;  %v358_v59 = vand.u32 2147483648, %v351_v54  ;;  %vm357_vm6 = vcmp.eq.f32.partialorder %v351_v54, 0.0 }
 0x50f   :  { %v350_v55 = vpop.xlane.xlu1 %349 }
 0x510   :  { %v352_v56 = vmul.f32 0.032258064, %v350_v55 }
 0x512   :  { %590 = vrsqrt.f32 %v352_v56  ;;  %vm362_vm7 = vcmp.eq.f32.partialorder %v352_v56, inf  ;;  %v365_v1 = vand.u32 2147483648, %v352_v56  ;;  %vm364_vm8 = vcmp.eq.f32.partialorder %v352_v56, 0.0 }
 0x518   :  { %v589_v57 = vpop.eup %588 }
 0x519   :  { %v354_v58 = vmul.f32 %v589_v57, %v351_v54 }
 0x51b   :  { %v356_v60 = vsel %vm355_vm5, %v351_v54, %v354_v58 }
 0x51c   :  { %v591_v61 = vpop.eup %590  ;;  %v359_v62 = vsel %vm357_vm6, %v358_v59, %v356_v60 }
 0x51d   :  { %v361_v63 = vmul.f32 %v591_v61, %v352_v56  ;;  %v367_v0 = vadd.f32 1e-06, %v359_v62 }
 0x51f   :  { %v363_v2 = vsel %vm362_vm7, %v352_v56, %v361_v63  ;;  %592 = vrcp.f32 %v367_v0 }
 0x520   :  { %v366_v3 = vsel %vm364_vm8, %v365_v1, %v363_v2 }
 0x521   :  { %v368_v4 = vadd.f32 1e-06, %v366_v3 }
 0x523   :  { %594 = vrcp.f32 %v368_v4 }
 0x529   :  { %v593_v5 = vpop.eup %592 }
 0x52a   :  { %v371_v6 = vmul.f32 %v593_v5, %v341_v39 }
 0x52c   :  { %531 = vmatprep.mubr.msk.f32.mxu0 %vm82_vm0, %v371_v6 }
 0x52d   :  { %v595_v7 = vpop.eup %594 }
 0x52e   :  { %v372_v8 = vmul.f32 %v595_v7, %v342_v43 }
 0x530   :  { %532 = vmatmul.mubr.msk.f32.vlgmr.msra.gmra.mrb[2].mxu0 %vm82_vm0, %v372_v8 }
 0x603   :  { %v533_v10 = vpop.f32.mrb[2].mxu0 }
 0x604   :  { %v462_v11 = vadd.f32 %v533_v10, %v480_v9  ;;  %v456_v12 = vpop.f32.mrb[3].mxu0 }
 0x605   :  { %v457_v13 = vadd.f32 %v480_v9, %v456_v12 }
 0x606   :  { %467 = vst.msk [vmem:[%s794_s8 + $0x8] sm:$0xff] %vm465_vm9, %v462_v11 }
 0x607   :  { %466 = vst.msk [vmem:[%s794_s8] sm:$0xff] %vm465_vm9, %v457_v13 }
 0x608   :  { %472 = vsyncpa [#allocation3], 1 }
 0x609   :  { %473 = vsyncpa [#allocation5], 1 }

</bundles_post_ra>
